<compile_context>
chip_gen: v6e
topology: v6e:2x2x1
jax: 0.10.0
libtpu: 0.0.40
codegen_flags: <defaults>
</compile_context>

<pallas_src>
import functools

import jax
import jax.numpy as jnp
from jax.experimental import pallas as pl
from jax.experimental.pallas import tpu as pltpu


# --------------------------------------------------------------------------------------
# Tiling helpers (host-side).
# --------------------------------------------------------------------------------------
def _pick_sublane_tile(n, limit, mult=8):
    """Largest tile along a sublane-facing dim: either n itself (full-dim block is always
    legal) or a divisor of n that is a multiple of `mult`, bounded by `limit`."""
    limit = max(int(limit), mult)
    if n <= limit:
        return n
    best = None
    for d in range(mult, limit + 1, mult):
        if n % d == 0:
            best = d
    return best if best is not None else n


def _pick_batch_tile(batch, limit):
    """Largest divisor of batch that is <= limit (leading dim: no (8,128) constraint)."""
    limit = max(1, min(int(limit), batch))
    for d in range(limit, 0, -1):
        if batch % d == 0:
            return d
    return 1


def _vmem_params(block_bytes_list, semantics):
    need = 2 * sum(block_bytes_list) + (2 << 20)          # x2 double buffering + headroom
    limit = int(min(max(need, 8 << 20), 64 << 20))        # stay inside v7x physical VMEM
    return pltpu.CompilerParams(dimension_semantics=semantics, vmem_limit_bytes=limit)


# --------------------------------------------------------------------------------------
# Default all-pairs edge_index path: lane-dense (TILE_I, nodes*F) delta tiles.
#   delta[i, j*F+f] = node[j, f] - node[i, f]
#     term_dst = sublane-broadcast of the flat (1, nodes*F) node row-major slab
#     term_src = node_tile @ R on the MXU, R = [I_F | ... | I_F]  (no XLU lane tiling)
# --------------------------------------------------------------------------------------
def _allpairs_kernel(rep_ref, node_ref, flat_ref, edge_ref, *, symmetric, tile_b):
    rep = rep_ref[...]                                        # (F, nodes*F), resident
    for bb in range(tile_b):                                  # static, unrolled
        node = node_ref[bb]                                   # (TILE_I, F), input dtype
        flat = flat_ref[bb]                                   # (1, nodes*F), input dtype
        # term_src[i, j*F+f] = node[i, f]; f32 accumulate then exact cast back (copy-through).
        term_src = jnp.dot(node, rep,
                           preferred_element_type=jnp.float32).astype(node.dtype)
        term_dst = jnp.broadcast_to(flat, term_src.shape)     # cheap sublane broadcast
        delta = term_dst - term_src                           # native-dtype VPU math
        if symmetric:
            delta = jnp.abs(delta)
        edge_ref[bb] = delta.astype(edge_ref.dtype)           # lane-dense store


# --------------------------------------------------------------------------------------
# User-supplied edge_index path: dense gather matrix G = onehot(dst) - onehot(src),
# tiled along E; delta tile = G_tile @ node on the MXU (f32 accumulation).
# --------------------------------------------------------------------------------------
def _gather_kernel(g_ref, node_ref, edge_ref, *, symmetric):
    delta = jnp.dot(g_ref[...], node_ref[0],
                    preferred_element_type=jnp.float32)       # (E_TILE, F)
    if symmetric:
        delta = jnp.abs(delta)
    edge_ref[0] = delta.astype(edge_ref.dtype)


def make_edge_index(nodes: int) -> jnp.ndarray:
    # torch: src = arange(n).repeat_interleave(n); dst = arange(n).repeat(n)  (int64 in torch)
    src = jnp.repeat(jnp.arange(nodes, dtype=jnp.int32), nodes)
    dst = jnp.tile(jnp.arange(nodes, dtype=jnp.int32), nodes)
    return jnp.stack([src, dst], axis=0)                      # (2, E)


def node_delta_preprocessor(data, *, key, in_features,
                            transform_w=None, transform_b=None,
                            symmetric=False, target_block_bytes=4 << 20):
    """Pallas-backed equivalent of NodeDeltaPreprocessor.forward.

    transform_w is stored as W^T (in_features, in_features); transform_b is (in_features,).
    """
    node_attr = data[key]
    if node_attr.ndim == 3:
        node_attr = node_attr[:, 0]
    batch, nodestates = node_attr.shape
    F = in_features
    nodes = nodestates // F
    dtype = node_attr.dtype
    itemsize = jnp.dtype(dtype).itemsize
    node_3d = node_attr.reshape(batch, nodes, F)

    # Optional Linear(F, F) hoisted to one batched XLA matmul (MXU-friendly, tiny HBM traffic
    # next to the edge writeback).  Kernel only ever sees the already-transformed node_attr.
    if transform_w is not None:
        node_t = (node_3d @ transform_w.astype(dtype)
                  + transform_b.reshape(1, 1, -1).astype(dtype)).astype(dtype)
    else:
        node_t = node_3d

    edge_index = data.get('edge_index', None)

    if edge_index is None:
        # ---------------- default all-pairs path (tiled lane-dense broadcast subtraction) ----
        edge_index = make_edge_index(nodes)
        E = nodes * nodes
        node_flat = node_t.reshape(batch, 1, nodes * F)        # free row-major view

        row_bytes = nodes * F * itemsize                       # one source-row slab of edges
        tile_i = _pick_sublane_tile(nodes, max(8, target_block_bytes // max(row_bytes, 1)))
        if tile_i >= nodes:
            tile_i = nodes
            per_batch = nodes * row_bytes
            tile_b = _pick_batch_tile(batch, max(1, target_block_bytes // max(per_batch, 1)))
        else:
            tile_b = 1

        rep = jnp.tile(jnp.eye(F, dtype=dtype), (1, nodes))    # (F, nodes*F), resident

        kernel = functools.partial(_allpairs_kernel, symmetric=symmetric, tile_b=tile_b)
        in_specs = [
            pl.BlockSpec((F, nodes * F), lambda b, i: (0, 0)),            # R, resident
            pl.BlockSpec((tile_b, tile_i, F), lambda b, i: (b, i, 0)),    # src rows
            pl.BlockSpec((tile_b, 1, nodes * F), lambda b, i: (b, 0, 0)), # flat dst slab
        ]
        out_specs = [pl.BlockSpec((tile_b, tile_i, nodes * F), lambda b, i: (b, i, 0))]
        out_shape = (jax.ShapeDtypeStruct((batch, nodes, nodes * F), dtype),)

        params = _vmem_params(
            [tile_b * tile_i * nodes * F * itemsize,
             tile_b * tile_i * F * itemsize,
             tile_b * nodes * F * itemsize,
             F * nodes * F * itemsize],
            ("parallel", "parallel"))

        outs = pl.pallas_call(
            kernel,
            out_shape=out_shape,
            grid_spec=pltpu.PrefetchScalarGridSpec(
                num_scalar_prefetch=0,
                grid=(batch // tile_b, nodes // tile_i),
                in_specs=in_specs,
                out_specs=out_specs),
            compiler_params=params,
        )(rep, node_t, node_flat)

        edge_out = outs[0].reshape(batch, E, F)                # free (row-major identity)
        node_out = node_t                                      # no redundant HBM write

    else:
        # ---------------- user-supplied (irregular) edge_index path --------------------------
        edge_index = edge_index.astype(jnp.int32)
        src, dst = edge_index[0], edge_index[1]
        E = int(src.shape[0])

        # Gather matrix in the node dtype: +/-1/0 are exact in bf16; f32 inputs keep f32.
        g_dtype = jnp.bfloat16 if dtype == jnp.bfloat16 else jnp.float32
        g_itemsize = jnp.dtype(g_dtype).itemsize
        col = jnp.arange(nodes, dtype=jnp.int32)
        gather = ((dst[:, None] == col[None, :]).astype(g_dtype)
                  - (src[:, None] == col[None, :]).astype(g_dtype))      # (E, nodes), built once
        # TODO(synk): for nodes >> 256 replace the dense-G MXU gather with scalar-prefetched
        # src/dst indices in SMEM + direct row gather + VPU subtract (O(E*F) vs O(E*nodes*F)).

        e_tile = _pick_sublane_tile(
            E, max(8, target_block_bytes // max(nodes * g_itemsize, 1)))

        kernel = functools.partial(_gather_kernel, symmetric=symmetric)
        in_specs = [
            pl.BlockSpec((e_tile, nodes), lambda b, e: (e, 0)),          # G tile
            pl.BlockSpec((1, nodes, F), lambda b, e: (b, 0, 0)),         # node_t, per-b resident
        ]
        out_specs = [pl.BlockSpec((1, e_tile, F), lambda b, e: (b, e, 0))]
        out_shape = (jax.ShapeDtypeStruct((batch, E, F), dtype),)

        params = _vmem_params(
            [e_tile * nodes * g_itemsize,
             nodes * F * itemsize,
             e_tile * F * itemsize],
            ("parallel", "parallel"))

        outs = pl.pallas_call(
            kernel,
            out_shape=out_shape,
            grid_spec=pltpu.PrefetchScalarGridSpec(
                num_scalar_prefetch=0,
                grid=(batch, E // e_tile),
                in_specs=in_specs,
                out_specs=out_specs),
            compiler_params=params,
        )(gather, node_t)

        edge_out = outs[0]
        node_out = node_t

    return {'node_attr': node_out, 'edge_attr': edge_out, 'edge_index': edge_index}


# --------------------------------------------------------------------------------------
# Pure-JAX reference mirroring the PyTorch forward.
# --------------------------------------------------------------------------------------
def _reference(data, *, key, in_features, transform_w=None, transform_b=None,
               symmetric=False):
    node_attr = data[key]
    if node_attr.ndim == 3:
        node_attr = node_attr[:, 0]
    batch, nodestates = node_attr.shape
    nodes = nodestates // in_features
    node_attr = node_attr.reshape(batch, nodes, in_features)
    if transform_w is not None:
        node_attr = node_attr @ transform_w + transform_b.reshape(1, 1, -1)
    edge_index = data.get('edge_index', make_edge_index(nodes)).astype(jnp.int32)
    src, dst = edge_index[0], edge_index[1]
    edge_attr = node_attr[:, dst, :] - node_attr[:, src, :]
    if symmetric:
        edge_attr = jnp.abs(edge_attr)
    return {'node_attr': node_attr, 'edge_attr': edge_attr, 'edge_index': edge_index}


def _check(out, ref, batch, E, nodes, F, name):
    assert out['node_attr'].shape == (batch, nodes, F), name
    assert out['edge_attr'].shape == (batch, E, F), name
    assert out['edge_index'].shape == (2, E), name
    assert jnp.allclose(out['node_attr'], ref['node_attr'], atol=1e-5, rtol=1e-5), name
    assert jnp.allclose(out['edge_attr'], ref['edge_attr'], atol=1e-5, rtol=1e-5), name
    assert jnp.array_equal(out['edge_index'], ref['edge_index']), name


if __name__ == "__main__":
    master = jax.random.PRNGKey(0)
    k_x, k_w, k_b, k_s, k_d, k_x2, k_s2, k_d2 = jax.random.split(master, 8)

    # Small shapes implied by the forward: batch=2, nodes=8, in_features=4
    # => node-state vector of length 32, default edge_index has E = 64 edges.
    batch, nodes, F = 2, 8, 4
    x = jax.random.normal(k_x, (batch, nodes * F), dtype=jnp.float32)
    w_t = jax.random.normal(k_w, (F, F), dtype=jnp.float32) * 0.1   # Linear weight, stored as W^T
    b = jax.random.normal(k_b, (F,), dtype=jnp.float32) * 0.1

    # 1) default all-pairs edge_index, fused Linear transform, symmetric
    data = {"states": x}
    out = node_delta_preprocessor(data, key="states", in_features=F,
                                  transform_w=w_t, transform_b=b, symmetric=True)
    out = jax.tree_util.tree_map(jax.block_until_ready, out)
    ref = _reference(data, key="states", in_features=F,
                     transform_w=w_t, transform_b=b, symmetric=True)
    _check(out, ref, batch, nodes * nodes, nodes, F, "allpairs+transform")

    # 2) default all-pairs edge_index, no transform
    out = node_delta_preprocessor(data, key="states", in_features=F, symmetric=False)
    out = jax.tree_util.tree_map(jax.block_until_ready, out)
    ref = _reference(data, key="states", in_features=F, symmetric=False)
    _check(out, ref, batch, nodes * nodes, nodes, F, "allpairs")

    # 3) user-supplied edge_index, transform
    E = 16
    src = jax.random.randint(k_s, (E,), 0, nodes, dtype=jnp.int32)
    dst = jax.random.randint(k_d, (E,), 0, nodes, dtype=jnp.int32)
    data2 = {"states": x, "edge_index": jnp.stack([src, dst], axis=0)}
    out = node_delta_preprocessor(data2, key="states", in_features=F,
                                  transform_w=w_t, transform_b=b, symmetric=False)
    out = jax.tree_util.tree_map(jax.block_until_ready, out)
    ref = _reference(data2, key="states", in_features=F,
                     transform_w=w_t, transform_b=b, symmetric=False)
    _check(out, ref, batch, E, nodes, F, "gather+transform")

    # 4) user-supplied edge_index, no transform, symmetric
    out = node_delta_preprocessor(data2, key="states", in_features=F, symmetric=True)
    out = jax.tree_util.tree_map(jax.block_until_ready, out)
    ref = _reference(data2, key="states", in_features=F, symmetric=True)
    _check(out, ref, batch, E, nodes, F, "gather")

    # 5) larger graph with a tiny block budget to exercise the i-axis tiling (TILE_I < nodes)
    nodes5, F5, batch5 = 32, 8, 2
    x5 = jax.random.normal(k_x2, (batch5, nodes5 * F5), dtype=jnp.float32)
    data5 = {"states": x5}
    out = node_delta_preprocessor(data5, key="states", in_features=F5, symmetric=True,
                                  target_block_bytes=4096)
    out = jax.tree_util.tree_map(jax.block_until_ready, out)
    ref = _reference(data5, key="states", in_features=F5, symmetric=True)
    _check(out, ref, batch5, nodes5 * nodes5, nodes5, F5, "allpairs tiled")

    # 6) larger user edge_index with a tiny budget to exercise the E-axis tiling
    E6 = 64
    src6 = jax.random.randint(k_s2, (E6,), 0, nodes5, dtype=jnp.int32)
    dst6 = jax.random.randint(k_d2, (E6,), 0, nodes5, dtype=jnp.int32)
    data6 = {"states": x5, "edge_index": jnp.stack([src6, dst6], axis=0)}
    out = node_delta_preprocessor(data6, key="states", in_features=F5, symmetric=False,
                                  target_block_bytes=1024)
    out = jax.tree_util.tree_map(jax.block_until_ready, out)
    ref = _reference(data6, key="states", in_features=F5, symmetric=False)
    _check(out, ref, batch5, E6, nodes5, F5, "gather tiled")

    print("KERNEL_OK")
</pallas_src>

<mosaic_0001>
module attributes {stable_mosaic.version = 11 : i64} {
  func.func @_allpairs_kernel(%arg0: i32, %arg1: i32, %arg2: memref<4x32xf32, #tpu.memory_space<vmem>>, %arg3: memref<2x8x4xf32, #tpu.memory_space<vmem>>, %arg4: memref<2x1x32xf32, #tpu.memory_space<vmem>>, %arg5: memref<2x8x32xf32, #tpu.memory_space<vmem>>) attributes {dimension_semantics = [#tpu.dimension_semantics<parallel>, #tpu.dimension_semantics<parallel>], iteration_bounds = array<i64: 1, 1>, scalar_prefetch = 0 : i64, scratch_operands = 0 : i64, tpu.core_type = #tpu.core_type<tc>, window_params = [{pipeline_mode = #tpu.pipeline_mode<synchronous>, transform_indices = @transform_0, window_bounds = array<i64: 4, 32>}, {transform_indices = @transform_1, window_bounds = array<i64: 2, 8, 4>}, {transform_indices = @transform_2, window_bounds = array<i64: 2, 1, 32>}, {transform_indices = @transform_3, window_bounds = array<i64: 2, 8, 32>}]} {
    %c0 = arith.constant 0 : index
    %c0_0 = arith.constant 0 : index
    %0 = vector.load %arg2[%c0, %c0_0] : memref<4x32xf32, #tpu.memory_space<vmem>>, vector<4x32xf32>
    %c0_1 = arith.constant 0 : index
    %c0_2 = arith.constant 0 : index
    %c0_3 = arith.constant 0 : index
    %1 = vector.load %arg3[%c0_1, %c0_2, %c0_3] : memref<2x8x4xf32, #tpu.memory_space<vmem>>, vector<1x8x4xf32>
    %2 = vector.shape_cast %1 : vector<1x8x4xf32> to vector<8x4xf32>
    %c0_4 = arith.constant 0 : index
    %c0_5 = arith.constant 0 : index
    %c0_6 = arith.constant 0 : index
    %3 = vector.load %arg4[%c0_4, %c0_5, %c0_6] : memref<2x1x32xf32, #tpu.memory_space<vmem>>, vector<1x1x32xf32>
    %4 = vector.shape_cast %3 : vector<1x1x32xf32> to vector<1x32xf32>
    %cst = arith.constant dense<0.000000e+00> : vector<8x32xf32>
    %5 = tpu.matmul %2, %0, %cst {dimension_numbers = #tpu.dot_dimension_numbers<[1], [0], [0], [1], [0, 0, 1, 1], [], []>} : vector<8x4xf32>, vector<4x32xf32>, vector<8x32xf32> -> vector<8x32xf32>
    %6 = vector.shape_cast %4 : vector<1x32xf32> to vector<1x32xf32>
    %7 = vector.broadcast %6 : vector<1x32xf32> to vector<8x32xf32>
    %8 = arith.subf %7, %5 : vector<8x32xf32>
    %9 = math.absf %8 : vector<8x32xf32>
    %c0_7 = arith.constant 0 : index
    %c0_8 = arith.constant 0 : index
    %c0_9 = arith.constant 0 : index
    %10 = vector.load %arg5[%c0_7, %c0_8, %c0_9] : memref<2x8x32xf32, #tpu.memory_space<vmem>>, vector<1x8x32xf32>
    %11 = vector.shape_cast %10 : vector<1x8x32xf32> to vector<8x32xf32>
    %12 = vector.shape_cast %9 : vector<8x32xf32> to vector<1x8x32xf32>
    tpu.vector_store %arg5[%c0_7, %c0_8, %c0_9], %12 {strides = array<i32>} : memref<2x8x32xf32, #tpu.memory_space<vmem>>, vector<1x8x32xf32>,
    %c1 = arith.constant 1 : index
    %c0_10 = arith.constant 0 : index
    %c0_11 = arith.constant 0 : index
    %13 = vector.load %arg3[%c1, %c0_10, %c0_11] : memref<2x8x4xf32, #tpu.memory_space<vmem>>, vector<1x8x4xf32>
    %14 = vector.shape_cast %13 : vector<1x8x4xf32> to vector<8x4xf32>
    %c1_12 = arith.constant 1 : index
    %c0_13 = arith.constant 0 : index
    %c0_14 = arith.constant 0 : index
    %15 = vector.load %arg4[%c1_12, %c0_13, %c0_14] : memref<2x1x32xf32, #tpu.memory_space<vmem>>, vector<1x1x32xf32>
    %16 = vector.shape_cast %15 : vector<1x1x32xf32> to vector<1x32xf32>
    %cst_15 = arith.constant dense<0.000000e+00> : vector<8x32xf32>
    %17 = tpu.matmul %14, %0, %cst_15 {dimension_numbers = #tpu.dot_dimension_numbers<[1], [0], [0], [1], [0, 0, 1, 1], [], []>} : vector<8x4xf32>, vector<4x32xf32>, vector<8x32xf32> -> vector<8x32xf32>
    %18 = vector.shape_cast %16 : vector<1x32xf32> to vector<1x32xf32>
    %19 = vector.broadcast %18 : vector<1x32xf32> to vector<8x32xf32>
    %20 = arith.subf %19, %17 : vector<8x32xf32>
    %21 = math.absf %20 : vector<8x32xf32>
    %c1_16 = arith.constant 1 : index
    %c0_17 = arith.constant 0 : index
    %c0_18 = arith.constant 0 : index
    %22 = vector.load %arg5[%c1_16, %c0_17, %c0_18] : memref<2x8x32xf32, #tpu.memory_space<vmem>>, vector<1x8x32xf32>
    %23 = vector.shape_cast %22 : vector<1x8x32xf32> to vector<8x32xf32>
    %24 = vector.shape_cast %21 : vector<8x32xf32> to vector<1x8x32xf32>
    tpu.vector_store %arg5[%c1_16, %c0_17, %c0_18], %24 {strides = array<i32>} : memref<2x8x32xf32, #tpu.memory_space<vmem>>, vector<1x8x32xf32>,
    return
  }
  func.func @transform_0(%arg0: i32, %arg1: i32) -> (i32, i32) {
    %c0_i32 = arith.constant 0 : i32
    %c0_i32_0 = arith.constant 0 : i32
    %c0_i32_1 = arith.constant 0 : i32
    return %c0_i32, %c0_i32_0 : i32, i32
  }
  func.func @transform_1(%arg0: i32, %arg1: i32) -> (i32, i32, i32) {
    %c0_i32 = arith.constant 0 : i32
    %c0_i32_0 = arith.constant 0 : i32
    return %arg0, %arg1, %c0_i32 : i32, i32, i32
  }
  func.func @transform_2(%arg0: i32, %arg1: i32) -> (i32, i32, i32) {
    %c0_i32 = arith.constant 0 : i32
    %c0_i32_0 = arith.constant 0 : i32
    %c0_i32_1 = arith.constant 0 : i32
    return %arg0, %c0_i32, %c0_i32_0 : i32, i32, i32
  }
  func.func @transform_3(%arg0: i32, %arg1: i32) -> (i32, i32, i32) {
    %c0_i32 = arith.constant 0 : i32
    %c0_i32_0 = arith.constant 0 : i32
    return %arg0, %arg1, %c0_i32 : i32, i32, i32
  }
}

</mosaic_0001>

<bundles_post_ra>
// kernel: tpu_custom_call.1
= control target key start
LH: loop header
LB: loop body
LE: loop exit
PB: predicated region body
PF: predicated region fallthrough
CT: control target
= control target key end

     0   :  { %vm22_vm0 = vcmask 1043456   ;;  %v258_v1 = vmov 0.0   ;;  %vm18_vm1 = vcmask 31744   ;;  %s301_s0 = inlined_call_operand.vmem [shape: f32[4,32], index: 0, kind: input, shape index: {}]   ;;  %s302_s1 = inlined_call_operand.vmem [shape: f32[2,8,4], index: 1, kind: input, shape index: {}]   ;;  %s303_s2 = inlined_call_operand.vmem [shape: f32[2,1,32], index: 2, kind: input, shape index: {}]   ;;  %s304_s3 = inlined_call_operand.hbm [shape: f32[2,8,32], index: 3, kind: output, shape index: {}]  }
   0x1   :  { %v15_v0 = vld [vmem:[%s301_s0] sm:$0xf]  ;;  %221 = vmatprep.subr.mxu0 %v258_v1  ;;  %226 = vmatprep.subr.mxu1 %v258_v1  ;;  %v212_v3 = vld [vmem:[%s302_s1 + $0x8] sm:$0xff] }
   0x2   :  { %v16_v2 = vld [vmem:[%s302_s1] sm:$0xff] }
   0x3   :  { %8 = vsyncpa [#allocation3], 0  ;;  %222 = vmatpush3.msk.msra.mxu0 %vm22_vm0, %v15_v0  ;;  %vm259_vm2 = vmmov 0   ;;  %227 = vmatpush3.msk.msra.mxu1 %vm22_vm0, %v15_v0  ;;  %v211_v4 = vld [vmem:[%s303_s2] ss:$0 sm:$0xff]  ;;  %s260_s21 = smov [#allocation2]  }
   0x4   :  { %223 = vmatprep.mubr.msk.f32.mxu0 %vm259_vm2, %v258_v1  ;;  %228 = vmatprep.mubr.msk.f32.mxu1 %vm259_vm2, %v258_v1  ;;  %v216_v5 = vld [vmem:[%s303_s2 + $0x1] ss:$0 sm:$0xff]  ;;  %s198_s22 = sshll.u32 %s260_s21, 4  ;;  %vm104_vm3 = vcmask 261120   ;;  %s199_s22 = int_to_ptr.vmem [resolvable:$true] %s198_s22 }
   0x5   :  { %224 = vmatmul.mubr.msk.f32.vlgmr.msra.gmra.mxu0 %vm18_vm1, %v16_v2  ;;  %229 = vmatmul.mubr.msk.f32.vlgmr.msra.gmra.mxu1 %vm18_vm1, %v212_v3  ;;  %s236_s1 = scalar_lea.vmem %s199_s22, 256  ;;  %p241_p1 = scmp.lt.s32.totalorder %s199_s22, %s199_s22 }
   0x6   :  { %p237_p0 = scmp.ne.s32.totalorder %s199_s22, %s236_s1  ;;  %p242_p2 = scmp.lt.s32.totalorder %s236_s1, %s236_s1 }
   0x8   :  { %p243_p3 = por %p242_p2, %p241_p1 }
   0xa   :  { %p244_p4 = pnand %p243_p3, %p237_p0 }
  0xc5   :  { %v92_v6 = vpop.f32.mrf.mxu0  ;;  %v179_v7 = vpop.f32.mrf.mxu1 }
  0xc6   :  { %v102_v8 = vsub.f32 %v211_v4, %v92_v6  ;;  %v189_v9 = vsub.f32 %v216_v5, %v179_v7 }
  0xc7   :  { %v225_v10 = vpop.f32.mrf.mxu0  ;;  %v230_v11 = vpop.f32.mrf.mxu1 }
  0xc8   :  { %v103_v12 = vand.u32 2147483647, %v102_v8  ;;  %v190_v13 = vand.u32 2147483647, %v189_v9 }
  0xca   :  { %105 = vst.msk [vmem:[#allocation2] sm:$0xff] %vm104_vm3, %v103_v12  ;;  %192 = vst.msk [vmem:[#allocation2 + $0x8] sm:$0xff] %vm104_vm3, %v190_v13 }
  0xcb   :  { %247 = shalt.err (!%p244_p4)
}
  0xcc   :  { %s261_s2 = smov 128   ;;  %s262_s23 = smov 8  }
  0xcd   :  { %204 = dma.vmem_to_hbm [thread:$0]  %s199_s22, 256, %s304_s3, [#allocation3], %s261_s2, %s261_s2, %s262_s23  }
  0xce   :  { %256 = dma.done.wait [#allocation3], 256  }
  0xcf   :  { %257 = vsyncadd [#allocation3], 4294967040 }
  0xd0   :  { %208 = vsyncpa [#allocation3], 1 }

</bundles_post_ra>
